<compile_context>
chip_gen: v5e
topology: v5e:2x2
jax: 0.10.0
libtpu: 0.0.40
codegen_flags: <defaults>
</compile_context>

<pallas_src>
import math
import jax
import jax.numpy as jnp
from jax.experimental import pallas as pl
from jax.experimental.pallas import tpu as pltpu

ACTOR_INPUTS = 4
HIDDEN_DIM = 128
N_ACTIONS = 3
OUT_PAD = 128          # N_ACTIONS padded up to a full lane width


def actor_kernel(s_ref, w1_ref, b1_ref, w2_ref, b2_ref, out_ref):
    # ---- layer 1: Linear(4 -> 128) + ReLU on the VPU ---------------------
    # K=4 is far too small for the MXU; 4 broadcast-FMAs finish in a handful
    # of bundles and skip the MXU round-trip entirely.
    s = s_ref[...]                       # (TM, 4)   f32
    w1 = w1_ref[...]                     # (4, 128)  f32
    h = (s[:, 0:1] * w1[0:1, :]
         + s[:, 1:2] * w1[1:2, :]
         + s[:, 2:3] * w1[2:3, :]
         + s[:, 3:4] * w1[3:4, :]
         + b1_ref[...])                  # (TM, 128)
    h = jnp.maximum(h, 0.0)              # ReLU

    # ---- layer 2: Linear(128 -> 3), padded to 128 output lanes -----------
    # Lane-dense (TM, 128) result -> unmasked full-width stores.
    logits = jnp.dot(h, w2_ref[...], preferred_element_type=jnp.float32)
    out_ref[...] = (logits + b2_ref[...]).astype(out_ref.dtype)


def actor_net_forward(s, w1, b1, w2, b2, *, tm=256):
    """ActorNet forward: relu(s @ W1 + b1) @ W2 + b2.

    s : (B, 4) f32
    w1: (4, 128) f32   (pre-transposed nn.Linear weight)
    b1: (1, 128) f32
    w2: (128, 3) f32   (pre-transposed nn.Linear weight)
    b2: (1, 3) f32
    returns (B, 3) f32 logits.
    """
    B = s.shape[0]

    # Batch tile: multiple of 8 (sublane).  Default 256 keeps v6e MXU rows
    # full for the second matmul and stays tiny vs. v7x's 32 MiB scoped VMEM
    # even with double buffering.
    if B <= tm:
        tm_eff = max(8, ((B + 7) // 8) * 8)
    else:
        tm_eff = tm
    b_pad = pl.cdiv(B, tm_eff) * tm_eff
    if b_pad != B:
        s = jnp.pad(s, ((0, b_pad - B), (0, 0)))

    # Zero-pad output projection to 128 lanes (lane-dense stores).  The extra
    # columns are exact zeros and are sliced off below (never softmax them).
    w2p = jnp.pad(w2, ((0, 0), (0, OUT_PAD - N_ACTIONS)))
    b2p = jnp.pad(b2, ((0, 0), (0, OUT_PAD - N_ACTIONS)))

    grid = (b_pad // tm_eff,)
    out = pl.pallas_call(
        actor_kernel,
        out_shape=jax.ShapeDtypeStruct((b_pad, OUT_PAD), jnp.float32),
        grid_spec=pltpu.PrefetchScalarGridSpec(
            num_scalar_prefetch=0,
            grid=grid,
            in_specs=[
                pl.BlockSpec((tm_eff, ACTOR_INPUTS), lambda i: (i, 0)),
                pl.BlockSpec((ACTOR_INPUTS, HIDDEN_DIM), lambda i: (0, 0)),
                pl.BlockSpec((1, HIDDEN_DIM), lambda i: (0, 0)),
                pl.BlockSpec((HIDDEN_DIM, OUT_PAD), lambda i: (0, 0)),
                pl.BlockSpec((1, OUT_PAD), lambda i: (0, 0)),
            ],
            out_specs=pl.BlockSpec((tm_eff, OUT_PAD), lambda i: (i, 0)),
        ),
        # Batch tiles are independent -> shard the grid across v7x's 2 TCs.
        compiler_params=pltpu.CompilerParams(
            dimension_semantics=("parallel",)),
    )(s, w1, b1, w2p, b2p)

    return out[:B, :N_ACTIONS]


def init_params(key):
    """Deterministic init mirroring PyTorch nn.Linear default (uniform ±1/sqrt(fan_in))."""
    k1, k2, k3, k4 = jax.random.split(key, 4)
    bound1 = 1.0 / math.sqrt(ACTOR_INPUTS)
    bound2 = 1.0 / math.sqrt(HIDDEN_DIM)
    # Stored pre-transposed: (in, out) so kernel does x @ W.
    w1 = jax.random.uniform(k1, (ACTOR_INPUTS, HIDDEN_DIM), jnp.float32,
                            minval=-bound1, maxval=bound1)
    b1 = jax.random.uniform(k2, (1, HIDDEN_DIM), jnp.float32,
                            minval=-bound1, maxval=bound1)
    w2 = jax.random.uniform(k3, (HIDDEN_DIM, N_ACTIONS), jnp.float32,
                            minval=-bound2, maxval=bound2)
    b2 = jax.random.uniform(k4, (1, N_ACTIONS), jnp.float32,
                            minval=-bound2, maxval=bound2)
    return w1, b1, w2, b2


if __name__ == "__main__":
    key = jax.random.PRNGKey(0)
    k_params, k_input = jax.random.split(key)

    w1, b1, w2, b2 = init_params(k_params)

    batch = 8
    s = jax.random.normal(k_input, (batch, ACTOR_INPUTS), jnp.float32)

    logits = actor_net_forward(s, w1, b1, w2, b2)
    jax.block_until_ready(logits)

    # Reference check in plain JAX (same math as the PyTorch forward).
    ref = jnp.maximum(s @ w1 + b1, 0.0) @ w2 + b2
    assert logits.shape == (batch, N_ACTIONS)
    assert jnp.allclose(logits, ref, atol=1e-5, rtol=1e-5)

    # Also exercise a batch that needs padding + multiple grid steps.
    big = jax.random.normal(k_input, (1000, ACTOR_INPUTS), jnp.float32)
    big_logits = actor_net_forward(big, w1, b1, w2, b2)
    jax.block_until_ready(big_logits)
    big_ref = jnp.maximum(big @ w1 + b1, 0.0) @ w2 + b2
    assert big_logits.shape == (1000, N_ACTIONS)
    assert jnp.allclose(big_logits, big_ref, atol=1e-4, rtol=1e-4)

    print("KERNEL_OK")
</pallas_src>

<mosaic_0001>
module attributes {stable_mosaic.version = 11 : i64} {
  func.func @actor_kernel(%arg0: i32, %arg1: memref<8x4xf32, #tpu.memory_space<vmem>>, %arg2: memref<4x128xf32, #tpu.memory_space<vmem>>, %arg3: memref<1x128xf32, #tpu.memory_space<vmem>>, %arg4: memref<128x128xf32, #tpu.memory_space<vmem>>, %arg5: memref<1x128xf32, #tpu.memory_space<vmem>>, %arg6: memref<8x128xf32, #tpu.memory_space<vmem>>) attributes {dimension_semantics = [#tpu.dimension_semantics<parallel>], iteration_bounds = array<i64: 1>, scalar_prefetch = 0 : i64, scratch_operands = 0 : i64, tpu.core_type = #tpu.core_type<tc>, window_params = [{transform_indices = @transform_0, window_bounds = array<i64: 8, 4>}, {pipeline_mode = #tpu.pipeline_mode<synchronous>, transform_indices = @transform_1, window_bounds = array<i64: 4, 128>}, {pipeline_mode = #tpu.pipeline_mode<synchronous>, transform_indices = @transform_2, window_bounds = array<i64: 1, 128>}, {pipeline_mode = #tpu.pipeline_mode<synchronous>, transform_indices = @transform_3, window_bounds = array<i64: 128, 128>}, {pipeline_mode = #tpu.pipeline_mode<synchronous>, transform_indices = @transform_4, window_bounds = array<i64: 1, 128>}, {transform_indices = @transform_5, window_bounds = array<i64: 8, 128>}]} {
    %c0 = arith.constant 0 : index
    %c0_0 = arith.constant 0 : index
    %0 = vector.load %arg1[%c0, %c0_0] : memref<8x4xf32, #tpu.memory_space<vmem>>, vector<8x4xf32>
    %c0_1 = arith.constant 0 : index
    %c0_2 = arith.constant 0 : index
    %1 = vector.load %arg2[%c0_1, %c0_2] : memref<4x128xf32, #tpu.memory_space<vmem>>, vector<4x128xf32>
    %2 = vector.extract_strided_slice %0 {offsets = [0, 0], sizes = [8, 1], strides = [1, 1]} : vector<8x4xf32> to vector<8x1xf32>
    %3 = vector.extract_strided_slice %1 {offsets = [0, 0], sizes = [1, 128], strides = [1, 1]} : vector<4x128xf32> to vector<1x128xf32>
    %4 = vector.broadcast %2 : vector<8x1xf32> to vector<8x128xf32>
    %5 = vector.broadcast %3 : vector<1x128xf32> to vector<8x128xf32>
    %6 = arith.mulf %4, %5 : vector<8x128xf32>
    %7 = vector.extract_strided_slice %0 {offsets = [0, 1], sizes = [8, 1], strides = [1, 1]} : vector<8x4xf32> to vector<8x1xf32>
    %8 = vector.extract_strided_slice %1 {offsets = [1, 0], sizes = [1, 128], strides = [1, 1]} : vector<4x128xf32> to vector<1x128xf32>
    %9 = vector.broadcast %7 : vector<8x1xf32> to vector<8x128xf32>
    %10 = vector.broadcast %8 : vector<1x128xf32> to vector<8x128xf32>
    %11 = arith.mulf %9, %10 : vector<8x128xf32>
    %12 = arith.addf %6, %11 : vector<8x128xf32>
    %13 = vector.extract_strided_slice %0 {offsets = [0, 2], sizes = [8, 1], strides = [1, 1]} : vector<8x4xf32> to vector<8x1xf32>
    %14 = vector.extract_strided_slice %1 {offsets = [2, 0], sizes = [1, 128], strides = [1, 1]} : vector<4x128xf32> to vector<1x128xf32>
    %15 = vector.broadcast %13 : vector<8x1xf32> to vector<8x128xf32>
    %16 = vector.broadcast %14 : vector<1x128xf32> to vector<8x128xf32>
    %17 = arith.mulf %15, %16 : vector<8x128xf32>
    %18 = arith.addf %12, %17 : vector<8x128xf32>
    %19 = vector.extract_strided_slice %0 {offsets = [0, 3], sizes = [8, 1], strides = [1, 1]} : vector<8x4xf32> to vector<8x1xf32>
    %20 = vector.extract_strided_slice %1 {offsets = [3, 0], sizes = [1, 128], strides = [1, 1]} : vector<4x128xf32> to vector<1x128xf32>
    %21 = vector.broadcast %19 : vector<8x1xf32> to vector<8x128xf32>
    %22 = vector.broadcast %20 : vector<1x128xf32> to vector<8x128xf32>
    %23 = arith.mulf %21, %22 : vector<8x128xf32>
    %24 = arith.addf %18, %23 : vector<8x128xf32>
    %c0_3 = arith.constant 0 : index
    %c0_4 = arith.constant 0 : index
    %25 = vector.load %arg3[%c0_3, %c0_4] : memref<1x128xf32, #tpu.memory_space<vmem>>, vector<1x128xf32>
    %26 = vector.broadcast %25 : vector<1x128xf32> to vector<8x128xf32>
    %27 = arith.addf %24, %26 : vector<8x128xf32>
    %cst = arith.constant 0.000000e+00 : f32
    %28 = vector.broadcast %cst : f32 to vector<8x128xf32>
    %29 = arith.maximumf %27, %28 : vector<8x128xf32>
    %c0_5 = arith.constant 0 : index
    %c0_6 = arith.constant 0 : index
    %30 = vector.load %arg4[%c0_5, %c0_6] : memref<128x128xf32, #tpu.memory_space<vmem>>, vector<128x128xf32>
    %cst_7 = arith.constant dense<0.000000e+00> : vector<8x128xf32>
    %31 = tpu.matmul %29, %30, %cst_7 {dimension_numbers = #tpu.dot_dimension_numbers<[1], [0], [0], [1], [0, 0, 1, 1], [], []>} : vector<8x128xf32>, vector<128x128xf32>, vector<8x128xf32> -> vector<8x128xf32>
    %c0_8 = arith.constant 0 : index
    %c0_9 = arith.constant 0 : index
    %32 = vector.load %arg5[%c0_8, %c0_9] : memref<1x128xf32, #tpu.memory_space<vmem>>, vector<1x128xf32>
    %33 = vector.broadcast %32 : vector<1x128xf32> to vector<8x128xf32>
    %34 = arith.addf %31, %33 : vector<8x128xf32>
    %c0_10 = arith.constant 0 : index
    %c0_11 = arith.constant 0 : index
    %35 = vector.load %arg6[%c0_10, %c0_11] : memref<8x128xf32, #tpu.memory_space<vmem>>, vector<8x128xf32>
    tpu.vector_store %arg6[%c0_10, %c0_11], %34 {strides = array<i32>} : memref<8x128xf32, #tpu.memory_space<vmem>>, vector<8x128xf32>,
    return
  }
  func.func @transform_0(%arg0: i32) -> (i32, i32) {
    %c0_i32 = arith.constant 0 : i32
    %c0_i32_0 = arith.constant 0 : i32
    return %arg0, %c0_i32 : i32, i32
  }
  func.func @transform_1(%arg0: i32) -> (i32, i32) {
    %c0_i32 = arith.constant 0 : i32
    %c0_i32_0 = arith.constant 0 : i32
    %c0_i32_1 = arith.constant 0 : i32
    return %c0_i32, %c0_i32_0 : i32, i32
  }
  func.func @transform_2(%arg0: i32) -> (i32, i32) {
    %c0_i32 = arith.constant 0 : i32
    %c0_i32_0 = arith.constant 0 : i32
    %c0_i32_1 = arith.constant 0 : i32
    return %c0_i32, %c0_i32_0 : i32, i32
  }
  func.func @transform_3(%arg0: i32) -> (i32, i32) {
    %c0_i32 = arith.constant 0 : i32
    %c0_i32_0 = arith.constant 0 : i32
    %c0_i32_1 = arith.constant 0 : i32
    return %c0_i32, %c0_i32_0 : i32, i32
  }
  func.func @transform_4(%arg0: i32) -> (i32, i32) {
    %c0_i32 = arith.constant 0 : i32
    %c0_i32_0 = arith.constant 0 : i32
    %c0_i32_1 = arith.constant 0 : i32
    return %c0_i32, %c0_i32_0 : i32, i32
  }
  func.func @transform_5(%arg0: i32) -> (i32, i32) {
    %c0_i32 = arith.constant 0 : i32
    %c0_i32_0 = arith.constant 0 : i32
    return %arg0, %c0_i32 : i32, i32
  }
}

</mosaic_0001>

<bundles_post_ra>
// kernel: tpu_custom_call.1
= control target key start
LH: loop header
LB: loop body
LE: loop exit
PB: predicated region body
PF: predicated region fallthrough
CT: control target
= control target key end

     0   :  { %10 = vsyncpa [#allocation3], 0  ;;  %s254_s0 = inlined_call_operand.vmem [shape: f32[8,4], index: 0, kind: input, shape index: {}]   ;;  %s255_s1 = inlined_call_operand.vmem [shape: f32[4,128], index: 1, kind: input, shape index: {}]   ;;  %s256_s2 = inlined_call_operand.vmem [shape: f32[1,128], index: 2, kind: input, shape index: {}]   ;;  %s257_s3 = inlined_call_operand.hbm [shape: f32[128,128], index: 3, kind: input, shape index: {}]   ;;  %s258_s4 = inlined_call_operand.vmem [shape: f32[1,128], index: 4, kind: input, shape index: {}]   ;;  %s259_s5 = inlined_call_operand.hbm [shape: f32[8,128], index: 5, kind: output, shape index: {}]  }
   0x1   :  { %11 = vsyncpa [#allocation4], 0  ;;  %s22_s20 = sshll.u32 %s257_s3, 4  ;;  %s198_s21 = smov [#allocation2]   ;;  %s23_s20 = int_to_ptr.hbm [resolvable:$true] %s22_s20 }
   0x2   :  { %s24_s22 = sshll.u32 %s198_s21, 4  ;;  %s199_s23 = smov 128   ;;  %s25_s22 = int_to_ptr.vmem [resolvable:$true] %s24_s22 }
   0x3   :  { %s200_s24 = smov 8  }
   0x4   :  { %30 = dma.hbm_to_vmem [thread:$0]  %s23_s20, 2048, %s25_s22, [#allocation3], %s199_s23, %s199_s23, %s200_s24  }
   0x5   :  { %194 = dma.done.wait [#allocation3], 2048  }
   0x6   :  { %195 = vsyncadd [#allocation3], 4294965248  ;;  %v201_v0 = vmov 0   ;;  %v202_v1 = vmov 2   ;;  %v37_v2 = vld [vmem:[%s254_s0] sm:$0xff]  ;;  %v88_v3 = vld [vmem:[#allocation2 + $0x78] sm:$0xff] }
   0x7   :  { %139 = vset.pattern.permute.xlu0 %v201_v0  ;;  %141 = vset.pattern.permute.xlu1 %v202_v1  ;;  %v87_v4 = vld [vmem:[#allocation2 + $0x70] sm:$0xff]  ;;  %v86_v5 = vld [vmem:[#allocation2 + $0x68] sm:$0xff]  ;;  %v85_v6 = vld [vmem:[#allocation2 + $0x60] sm:$0xff]  ;;  %v203_v8 = vmov 1   ;;  %v204_v9 = vmov 3   ;;  %s205_s30 = smov [#allocation5]  }
   0x8   :  { %41 = vperm.xlu0 %139, %v37_v2   ;;  %54 = vperm.xlu1 %141, %v37_v2   ;;  %v84_v7 = vld [vmem:[#allocation2 + $0x58] sm:$0xff]  ;;  %v83_v10 = vld [vmem:[#allocation2 + $0x50] sm:$0xff]  ;;  %v82_v11 = vld [vmem:[#allocation2 + $0x48] sm:$0xff]  ;;  %s119_s6 = sshll.u32 %s205_s30, 4  ;;  %s121_s9 = sshll.u32 %s259_s5, 4  ;;  %s120_s6 = int_to_ptr.vmem [resolvable:$true] %s119_s6  ;;  %s122_s9 = int_to_ptr.hbm [resolvable:$true] %s121_s9 }
   0x9   :  { %93 = vmatpush.msra.mxu0 %v88_v3  ;;  %v81_v12 = vld [vmem:[#allocation2 + $0x40] sm:$0xff]  ;;  %v80_v13 = vld [vmem:[#allocation2 + $0x38] sm:$0xff]  ;;  %v79_v14 = vld [vmem:[#allocation2 + $0x30] sm:$0xff] }
   0xa   :  { %v78_v15 = vld [vmem:[#allocation2 + $0x28] sm:$0xff]  ;;  %v77_v16 = vld [vmem:[#allocation2 + $0x20] sm:$0xff]  ;;  %v76_v17 = vld [vmem:[#allocation2 + $0x18] sm:$0xff] }
   0xb   :  { %94 = vmatpush.msra.mxu0 %v87_v4  ;;  %v75_v18 = vld [vmem:[#allocation2 + $0x10] sm:$0xff]  ;;  %v74_v19 = vld [vmem:[#allocation2 + $0x8] sm:$0xff]  ;;  %v73_v20 = vld [vmem:[#allocation2] sm:$0xff] }
   0xc   :  { %v38_v23 = vld [vmem:[%s255_s1] sm:$0xf] }
   0xd   :  { %95 = vmatpush.msra.mxu0 %v86_v5  ;;  %v44_v24 = vperm.slane %v38_v23, 0  ;;  %v50_v25 = vperm.slane %v38_v23, 1  ;;  %v57_v26 = vperm.slane %v38_v23, 2  ;;  %v64_v27 = vperm.slane %v38_v23, 3  ;;  %v144_v36 = vld [vmem:[%s256_s2] ss:$0 sm:$0xff] }
   0xe   :  { %v145_v40 = vld [vmem:[%s258_s4] ss:$0 sm:$0xff] }
   0xf   :  { %96 = vmatpush.msra.mxu0 %v85_v6 }
  0x10   :  { %140 = vset.pattern.permute.xlu0 %v203_v8  ;;  %142 = vset.pattern.permute.xlu1 %v204_v9 }
  0x11   :  { %47 = vperm.xlu0 %140, %v37_v2   ;;  %61 = vperm.xlu1 %142, %v37_v2  }
  0x12   :  { %97 = vmatpush.msra.mxu0 %v84_v7 }
  0x14   :  { %98 = vmatpush.msra.mxu0 %v83_v10 }
  0x16   :  { %99 = vmatpush.msra.mxu0 %v82_v11 }
  0x18   :  { %100 = vmatpush.msra.mxu0 %v81_v12 }
  0x19   :  { %143 = vset.pattern.permute.xlu0 %v204_v9 }
  0x1a   :  { %101 = vmatpush.msra.mxu0 %v80_v13 }
  0x1c   :  { %102 = vmatpush.msra.mxu0 %v79_v14 }
  0x1e   :  { %103 = vmatpush.msra.mxu0 %v78_v15 }
  0x20   :  { %104 = vmatpush.msra.mxu0 %v77_v16 }
  0x22   :  { %105 = vmatpush.msra.mxu0 %v76_v17 }
  0x24   :  { %106 = vmatpush.msra.mxu0 %v75_v18 }
  0x26   :  { %107 = vmatpush.msra.mxu0 %v74_v19 }
  0x28   :  { %108 = vmatpush.msra.mxu0 %v73_v20 }
  0x7a   :  { %v42_v21 = vpop.permute.xlu0 %41  ;;  %v55_v22 = vpop.permute.xlu1 %54 }
  0x7b   :  { %v45_v30 = vmul.f32 %v44_v24, %v42_v21  ;;  %v58_v32 = vmul.f32 %v57_v26, %v55_v22 }
  0x83   :  { %v48_v28 = vpop.permute.xlu0 %47  ;;  %v62_v29 = vpop.permute.xlu1 %61 }
  0x84   :  { %v51_v31 = vmul.f32 %v50_v25, %v48_v28  ;;  %v65_v34 = vmul.f32 %v64_v27, %v62_v29 }
  0x86   :  { %v52_v33 = vadd.f32 %v51_v31, %v45_v30 }
  0x88   :  { %v59_v35 = vadd.f32 %v58_v32, %v52_v33 }
  0x8a   :  { %v66_v37 = vadd.f32 %v65_v34, %v59_v35 }
  0x8c   :  { %v71_v38 = vadd.f32 %v144_v36, %v66_v37 }
  0x8e   :  { %v72_v39 = vmax.f32 %v71_v38, 0.0 }
  0x90   :  { %109 = vmatmul.f32.vlgmr.msra.gmra.mxu0 %v72_v39 }
 0x10d   :  { %v110_v41 = vpop.f32.mrf.mxu0 }
 0x10e   :  { %v111_v42 = vadd.f32 %v145_v40, %v110_v41 }
 0x110   :  { %113 = vst [vmem:[#allocation5] sm:$0xff] %v111_v42 }
 0x111   :  { %124 = dma.vmem_to_hbm [thread:$0]  %s120_s6, 128, %s122_s9, [#allocation4]  }
 0x112   :  { %196 = dma.done.wait [#allocation4], 128  }
 0x113   :  { %197 = vsyncadd [#allocation4], 4294967168 }
 0x114   :  { %129 = vsyncpa [#allocation3], 1 }
 0x115   :  { %130 = vsyncpa [#allocation4], 1 }

</bundles_post_ra>
